<compile_context>
chip_gen: v7x
topology: tpu7x:2x2x1
jax: 0.10.0
libtpu: 0.0.40
codegen_flags: <defaults>
</compile_context>

<pallas_src>
import functools

import jax
import jax.numpy as jnp
from jax.experimental import pallas as pl
from jax.experimental.pallas import tpu as pltpu


# ----------------------------------------------------------------------------
# Small synthetic config (real model: dim_in=(2048, 256), dim_inner=512,
# T=8, H=W=14, fast pathway has alpha*T frames).  H=W=7 is chosen so that
# T*H*W is NOT a multiple of 128 and the ragged-tail masking path (the one the
# real 1568-element spatial axis needs) is exercised on TPU.
# ----------------------------------------------------------------------------
B = 2
DIM_IN_SLOW = 32     # dim_in[0]
DIM_IN_FAST = 8      # dim_in[1]
DIM_INNER = 16
T = 4                # slow-pathway frames
ALPHA = 2            # fast pathway has ALPHA * T frames
H = 7
W = 7
NUM_CLASSES = 10
LANE = 128


def _round_up(x, m):
    return ((x + m - 1) // m) * m


def _vmem_limit_bytes():
    """Generation-aware scoped-VMEM limit (review item 6)."""
    cap = None
    try:
        cap = int(getattr(pltpu.get_tpu_info(), "vmem_capacity_bytes", 0)) or None
    except Exception:
        cap = None
    if cap is None:
        return 48 * 1024 * 1024
    if cap >= 100 * 1024 * 1024:          # v5e / v6e: 128 MiB physical
        return 64 * 1024 * 1024
    # v7x-class chips (64 MiB physical): leave headroom.
    return min(48 * 1024 * 1024, max(cap // 2, 16 * 1024 * 1024))


# ----------------------------------------------------------------------------
# Fused BasicHead kernel
# ----------------------------------------------------------------------------
def _basic_head_kernel(xs_ref, xf_ref, wct_ref, bc_ref, ws_ref, wf_ref, bp_ref,
                       out_ref, acc_s_ref, acc_f_ref, *,
                       thw_slow, thw_fast, block_slow, block_fast):
    """Grid = (B, n_tiles).  Pure streaming spatial-sum over both pathways,
    with conv5 + bias + projection applied once per batch in the finalize
    (pool-before-conv fold: mean(Wx) + b == W mean(x) + b)."""
    j = pl.program_id(1)

    @pl.when(j == 0)
    def _init():
        acc_s_ref[...] = jnp.zeros_like(acc_s_ref)
        acc_f_ref[...] = jnp.zeros_like(acc_f_ref)

    # ---- slow pathway: accumulate per-channel spatial sum (f32) ------------
    xs = xs_ref[0].astype(jnp.float32)                      # (C_s, block_slow)
    if thw_slow % block_slow != 0:
        # Ragged tail: boundary-block lanes past the true extent hold garbage;
        # mask them to zero (zeros do not change the sum).
        col = jax.lax.broadcasted_iota(jnp.int32, xs.shape, 1)
        xs = jnp.where(col < (thw_slow - j * block_slow), xs, 0.0)
    acc_s_ref[...] += jnp.sum(xs, axis=-1, keepdims=True)   # (C_s, 1)

    # ---- fast pathway: same streaming reduce, its own tile size ------------
    xf = xf_ref[0].astype(jnp.float32)                      # (C_f, block_fast)
    if thw_fast % block_fast != 0:
        col = jax.lax.broadcasted_iota(jnp.int32, xf.shape, 1)
        xf = jnp.where(col < (thw_fast - j * block_fast), xf, 0.0)
    acc_f_ref[...] += jnp.sum(xf, axis=-1, keepdims=True)   # (C_f, 1)

    @pl.when(j == pl.num_programs(1) - 1)
    def _finalize():
        # One sublane->lane relayout per pathway per batch element (not per tile).
        mean_s = jnp.sum(acc_s_ref[...], axis=-1)[None, :] * (1.0 / thw_slow)  # (1, C_s)
        mean_f = jnp.sum(acc_f_ref[...], axis=-1)[None, :] * (1.0 / thw_fast)  # (1, C_f)
        # conv5 (1x1) applied to the pooled slow features; weight stored
        # transposed as (C_s, dim_inner) so this is a plain row @ matrix dot.
        pooled_slow = jnp.dot(mean_s, wct_ref[...],
                              preferred_element_type=jnp.float32) + bc_ref[...]  # (1, D)
        # Dropout(0.5) is identity in eval mode; projection of the concatenated
        # [slow | fast] features with the weight pre-split by input rows.
        cls = jnp.dot(pooled_slow, ws_ref[...], preferred_element_type=jnp.float32)
        cls = cls + jnp.dot(mean_f, wf_ref[...], preferred_element_type=jnp.float32)
        out_ref[0] = (cls + bp_ref[...]).astype(out_ref.dtype)


# ----------------------------------------------------------------------------
# Wrapper
# ----------------------------------------------------------------------------
def basic_head_forward(x_slow, x_fast, params, *, num_classes,
                       block_thw_slow=None):
    b, cs, t, h, w = x_slow.shape
    bf_, cf, tf, hf, wf_sp = x_fast.shape
    assert b == bf_
    thw_s = t * h * w
    thw_f = tf * hf * wf_sp

    # Free reshape (merges contiguous trailing dims of NCTHW).  NO dtype cast
    # and NO zero-pad here: an out-of-kernel astype/pad is an extra full-tensor
    # HBM pass; the kernel casts per tile and masks the ragged tail instead.
    xs = x_slow.reshape(b, cs, thw_s)
    xf = x_fast.reshape(b, cf, thw_f)

    # Lane-dense tiles (multiples of 128) on the reduction axis; the grid is a
    # ceiling-divide so shapes like THW=1568 still pipeline (review item 5).
    if block_thw_slow is None:
        block_thw_slow = min(512, _round_up(thw_s, 128))
    n_tiles = int(pl.cdiv(thw_s, block_thw_slow))
    block_thw_fast = _round_up(int(pl.cdiv(thw_f, n_tiles)), 128)
    # Every tile's start offset must be in bounds (the kernel masks the ragged
    # tail; a wholly out-of-range tile would be an OOB DMA).
    assert (n_tiles - 1) * block_thw_slow < thw_s
    assert (n_tiles - 1) * block_thw_fast < thw_f

    dim_inner = params["conv5_wt"].shape[1]
    nc_pad = params["proj_b"].shape[-1]

    kernel = functools.partial(
        _basic_head_kernel,
        thw_slow=float(thw_s), thw_fast=float(thw_f),
        block_slow=block_thw_slow, block_fast=block_thw_fast)

    out = pl.pallas_call(
        kernel,
        out_shape=jax.ShapeDtypeStruct((b, 1, nc_pad), jnp.float32),
        grid=(b, n_tiles),
        in_specs=[
            pl.BlockSpec((1, cs, block_thw_slow), lambda i, j: (i, 0, j)),  # slow tile
            pl.BlockSpec((1, cf, block_thw_fast), lambda i, j: (i, 0, j)),  # fast tile
            pl.BlockSpec((cs, dim_inner), lambda i, j: (0, 0)),   # conv5 weight (transposed)
            pl.BlockSpec((1, dim_inner), lambda i, j: (0, 0)),    # conv5 bias
            pl.BlockSpec((dim_inner, nc_pad), lambda i, j: (0, 0)),  # proj weight, slow rows
            pl.BlockSpec((cf, nc_pad), lambda i, j: (0, 0)),         # proj weight, fast rows
            pl.BlockSpec((1, nc_pad), lambda i, j: (0, 0)),          # proj bias (lane-padded)
        ],
        out_specs=pl.BlockSpec((1, 1, nc_pad), lambda i, j: (i, 0, 0)),
        scratch_shapes=[pltpu.VMEM((cs, 1), jnp.float32),   # slow spatial-sum accumulator
                        pltpu.VMEM((cf, 1), jnp.float32)],  # fast spatial-sum accumulator
        compiler_params=pltpu.CompilerParams(
            dimension_semantics=("parallel", "arbitrary"),
            vmem_limit_bytes=_vmem_limit_bytes()),
    )(xs, xf, params["conv5_wt"], params["conv5_b"],
      params["proj_w_slow"], params["proj_w_fast"], params["proj_b"])

    # eval-mode softmax in the reference is applied to the (un-returned)
    # feature tensor, so it does not affect cls_output and is not emitted.
    return out[:, 0, :num_classes]


# ----------------------------------------------------------------------------
# Parameters (deterministic synthetic init; shapes from __init__)
# ----------------------------------------------------------------------------
def init_params(key, dim_in=(DIM_IN_SLOW, DIM_IN_FAST), dim_inner=DIM_INNER,
                num_classes=NUM_CLASSES):
    k0, k1, k2, k3 = jax.random.split(key, 4)
    s = 0.02
    nc_pad = _round_up(num_classes, LANE)
    conv5_w = s * jax.random.normal(k0, (dim_inner, dim_in[0]), jnp.float32)
    conv5_b = s * jax.random.normal(k1, (1, dim_inner), jnp.float32)
    proj_w = s * jax.random.normal(k2, (dim_inner + dim_in[1], num_classes),
                                   jnp.float32)
    proj_b = s * jax.random.normal(k3, (1, num_classes), jnp.float32)
    # Pad the class axis to a lane-dense multiple of 128 (unmasked stores) and
    # split the projection weight by input rows (slow | fast) so the kernel
    # never materializes the concatenated feature vector.
    proj_w_pad = jnp.zeros((dim_inner + dim_in[1], nc_pad), jnp.float32)
    proj_w_pad = proj_w_pad.at[:, :num_classes].set(proj_w)
    proj_b_pad = jnp.zeros((1, nc_pad), jnp.float32).at[:, :num_classes].set(proj_b)
    return {
        # With the pool-before-conv fold the conv weight is applied once per
        # batch element to a pooled vector, so it stays f32 (tiny), stored
        # transposed (C_s, dim_inner) to match the (1, C_s) row layout.
        "conv5_wt": jnp.transpose(conv5_w),
        "conv5_b": conv5_b,
        "proj_w_slow": proj_w_pad[:dim_inner],
        "proj_w_fast": proj_w_pad[dim_inner:],
        "proj_b": proj_b_pad,
    }


# ----------------------------------------------------------------------------
# Pure-JAX reference (follows the PyTorch op order exactly: conv -> pool)
# ----------------------------------------------------------------------------
def basic_head_reference(x_slow, x_fast, params, num_classes):
    wc = jnp.transpose(params["conv5_wt"])                   # (D, C_s)
    bc = params["conv5_b"]                                   # (1, D)
    conv = jnp.einsum("dc,bcthw->bdthw", wc, x_slow,
                      precision=jax.lax.Precision.HIGHEST)
    conv = conv + bc.reshape(1, -1, 1, 1, 1)
    pooled_slow = conv.mean(axis=(2, 3, 4))                  # (B, D)
    pooled_fast = x_fast.mean(axis=(2, 3, 4))                # (B, C_f)
    feat = jnp.concatenate([pooled_slow, pooled_fast], axis=1)
    w = jnp.concatenate([params["proj_w_slow"], params["proj_w_fast"]], axis=0)
    cls = jnp.dot(feat, w, precision=jax.lax.Precision.HIGHEST) + params["proj_b"]
    return cls[:, :num_classes]


# ----------------------------------------------------------------------------
# Driver
# ----------------------------------------------------------------------------
if __name__ == "__main__":
    key = jax.random.PRNGKey(0)
    kx, kf, kp = jax.random.split(key, 3)

    x_slow = jax.random.normal(kx, (B, DIM_IN_SLOW, T, H, W), jnp.float32)
    x_fast = jax.random.normal(kf, (B, DIM_IN_FAST, ALPHA * T, H, W), jnp.float32)
    params = init_params(kp)

    # block_thw_slow=128 forces a multi-tile spatial reduction at this small
    # size so the accumulator init/accumulate/finalize path AND the ragged-tail
    # masking (THW=196 and 392 are not multiples of 128) are exercised on TPU.
    fwd = jax.jit(functools.partial(basic_head_forward,
                                    num_classes=NUM_CLASSES,
                                    block_thw_slow=128))
    cls_output = jax.block_until_ready(fwd(x_slow, x_fast, params))

    assert cls_output.shape == (B, NUM_CLASSES)
    assert bool(jnp.all(jnp.isfinite(cls_output)))

    ref = basic_head_reference(x_slow, x_fast, params, NUM_CLASSES)
    assert bool(jnp.allclose(cls_output, ref, rtol=2e-2, atol=5e-4)), (
        "mismatch vs reference", cls_output, ref)

    print("KERNEL_OK")
</pallas_src>

<mosaic_0001>
module attributes {stable_mosaic.version = 11 : i64} {
  func.func @_basic_head_kernel(%arg0: i32, %arg1: i32, %arg2: memref<1x32x128xf32, #tpu.memory_space<vmem>>, %arg3: memref<1x8x256xf32, #tpu.memory_space<vmem>>, %arg4: memref<32x16xf32, #tpu.memory_space<vmem>>, %arg5: memref<1x16xf32, #tpu.memory_space<vmem>>, %arg6: memref<16x128xf32, #tpu.memory_space<vmem>>, %arg7: memref<8x128xf32, #tpu.memory_space<vmem>>, %arg8: memref<1x128xf32, #tpu.memory_space<vmem>>, %arg9: memref<1x1x128xf32, #tpu.memory_space<vmem>>, %arg10: memref<32x1xf32, #tpu.memory_space<vmem>>, %arg11: memref<8x1xf32, #tpu.memory_space<vmem>>) attributes {dimension_semantics = [#tpu.dimension_semantics<parallel>, #tpu.dimension_semantics<arbitrary>], iteration_bounds = array<i64: 2, 2>, scalar_prefetch = 0 : i64, scratch_operands = 2 : i64, tpu.core_type = #tpu.core_type<tc>, window_params = [{transform_indices = @transform_0, window_bounds = array<i64: 1, 32, 128>}, {transform_indices = @transform_1, window_bounds = array<i64: 1, 8, 256>}, {pipeline_mode = #tpu.pipeline_mode<synchronous>, transform_indices = @transform_2, window_bounds = array<i64: 32, 16>}, {pipeline_mode = #tpu.pipeline_mode<synchronous>, transform_indices = @transform_3, window_bounds = array<i64: 1, 16>}, {pipeline_mode = #tpu.pipeline_mode<synchronous>, transform_indices = @transform_4, window_bounds = array<i64: 16, 128>}, {pipeline_mode = #tpu.pipeline_mode<synchronous>, transform_indices = @transform_5, window_bounds = array<i64: 8, 128>}, {pipeline_mode = #tpu.pipeline_mode<synchronous>, transform_indices = @transform_6, window_bounds = array<i64: 1, 128>}, {transform_indices = @transform_7, window_bounds = array<i64: 1, 1, 128>}]} {
    %c0_i32 = arith.constant 0 : i32
    %0 = arith.cmpi eq, %arg1, %c0_i32 : i32
    %1 = arith.extui %0 : i1 to i32
    %c0_i32_0 = arith.constant 0 : i32
    %2 = arith.cmpi ne, %1, %c0_i32_0 : i32
    scf.if %2 {
      %cst_20 = arith.constant 0.000000e+00 : f32
      %38 = vector.broadcast %cst_20 : f32 to vector<32x1xf32>
      %c0_21 = arith.constant 0 : index
      %c0_22 = arith.constant 0 : index
      %39 = vector.load %arg10[%c0_21, %c0_22] : memref<32x1xf32, #tpu.memory_space<vmem>>, vector<32x1xf32>
      tpu.vector_store %arg10[%c0_21, %c0_22], %38 {strides = array<i32>} : memref<32x1xf32, #tpu.memory_space<vmem>>, vector<32x1xf32>,
      %cst_23 = arith.constant 0.000000e+00 : f32
      %40 = vector.broadcast %cst_23 : f32 to vector<8x1xf32>
      %c0_24 = arith.constant 0 : index
      %c0_25 = arith.constant 0 : index
      %41 = vector.load %arg11[%c0_24, %c0_25] : memref<8x1xf32, #tpu.memory_space<vmem>>, vector<8x1xf32>
      tpu.vector_store %arg11[%c0_24, %c0_25], %40 {strides = array<i32>} : memref<8x1xf32, #tpu.memory_space<vmem>>, vector<8x1xf32>,
    } else {
    }
    %c0 = arith.constant 0 : index
    %c0_1 = arith.constant 0 : index
    %c0_2 = arith.constant 0 : index
    %3 = vector.load %arg2[%c0, %c0_1, %c0_2] : memref<1x32x128xf32, #tpu.memory_space<vmem>>, vector<1x32x128xf32>
    %4 = vector.shape_cast %3 : vector<1x32x128xf32> to vector<32x128xf32>
    %5 = tpu.iota {dimensions = array<i32: 1>} : vector<32x128xi32>
    %c128_i32 = arith.constant 128 : i32
    %6 = arith.muli %arg1, %c128_i32 : i32
    %7 = arith.sitofp %6 : i32 to f32
    %cst = arith.constant 1.960000e+02 : f32
    %8 = arith.subf %cst, %7 : f32
    %9 = arith.sitofp %5 : vector<32x128xi32> to vector<32x128xf32>
    %10 = vector.broadcast %8 : f32 to vector<32x128xf32>
    %11 = arith.cmpf olt, %9, %10 : vector<32x128xf32>
    %cst_3 = arith.constant 0.000000e+00 : f32
    %12 = vector.broadcast %cst_3 : f32 to vector<32x128xf32>
    %13 = arith.select %11, %4, %12 : vector<32x128xi1>, vector<32x128xf32>
    %c0_4 = arith.constant 0 : index
    %c0_5 = arith.constant 0 : index
    %14 = vector.load %arg10[%c0_4, %c0_5] : memref<32x1xf32, #tpu.memory_space<vmem>>, vector<32x1xf32>
    %cst_6 = arith.constant dense<0.000000e+00> : vector<32xf32>
    %15 = vector.multi_reduction <add>, %13, %cst_6 [1] : vector<32x128xf32> to vector<32xf32>
    %16 = vector.shape_cast %15 : vector<32xf32> to vector<32x1xf32>
    %17 = arith.addf %14, %16 : vector<32x1xf32>
    %c0_7 = arith.constant 0 : index
    %c0_8 = arith.constant 0 : index
    %18 = vector.load %arg10[%c0_7, %c0_8] : memref<32x1xf32, #tpu.memory_space<vmem>>, vector<32x1xf32>
    tpu.vector_store %arg10[%c0_7, %c0_8], %17 {strides = array<i32>} : memref<32x1xf32, #tpu.memory_space<vmem>>, vector<32x1xf32>,
    %c0_9 = arith.constant 0 : index
    %c0_10 = arith.constant 0 : index
    %c0_11 = arith.constant 0 : index
    %19 = vector.load %arg3[%c0_9, %c0_10, %c0_11] : memref<1x8x256xf32, #tpu.memory_space<vmem>>, vector<1x8x256xf32>
    %20 = vector.shape_cast %19 : vector<1x8x256xf32> to vector<8x256xf32>
    %21 = tpu.iota {dimensions = array<i32: 1>} : vector<8x256xi32>
    %c256_i32 = arith.constant 256 : i32
    %22 = arith.muli %arg1, %c256_i32 : i32
    %23 = arith.sitofp %22 : i32 to f32
    %cst_12 = arith.constant 3.920000e+02 : f32
    %24 = arith.subf %cst_12, %23 : f32
    %25 = arith.sitofp %21 : vector<8x256xi32> to vector<8x256xf32>
    %26 = vector.broadcast %24 : f32 to vector<8x256xf32>
    %27 = arith.cmpf olt, %25, %26 : vector<8x256xf32>
    %cst_13 = arith.constant 0.000000e+00 : f32
    %28 = vector.broadcast %cst_13 : f32 to vector<8x256xf32>
    %29 = arith.select %27, %20, %28 : vector<8x256xi1>, vector<8x256xf32>
    %c0_14 = arith.constant 0 : index
    %c0_15 = arith.constant 0 : index
    %30 = vector.load %arg11[%c0_14, %c0_15] : memref<8x1xf32, #tpu.memory_space<vmem>>, vector<8x1xf32>
    %cst_16 = arith.constant dense<0.000000e+00> : vector<8xf32>
    %31 = vector.multi_reduction <add>, %29, %cst_16 [1] : vector<8x256xf32> to vector<8xf32>
    %32 = vector.shape_cast %31 : vector<8xf32> to vector<8x1xf32>
    %33 = arith.addf %30, %32 : vector<8x1xf32>
    %c0_17 = arith.constant 0 : index
    %c0_18 = arith.constant 0 : index
    %34 = vector.load %arg11[%c0_17, %c0_18] : memref<8x1xf32, #tpu.memory_space<vmem>>, vector<8x1xf32>
    tpu.vector_store %arg11[%c0_17, %c0_18], %33 {strides = array<i32>} : memref<8x1xf32, #tpu.memory_space<vmem>>, vector<8x1xf32>,
    %c1_i32 = arith.constant 1 : i32
    %35 = arith.cmpi eq, %arg1, %c1_i32 : i32
    %36 = arith.extui %35 : i1 to i32
    %c0_i32_19 = arith.constant 0 : i32
    %37 = arith.cmpi ne, %36, %c0_i32_19 : i32
    scf.if %37 {
      %c0_20 = arith.constant 0 : index
      %c0_21 = arith.constant 0 : index
      %38 = vector.load %arg10[%c0_20, %c0_21] : memref<32x1xf32, #tpu.memory_space<vmem>>, vector<32x1xf32>
      %cst_22 = arith.constant dense<0.000000e+00> : vector<32xf32>
      %39 = vector.multi_reduction <add>, %38, %cst_22 [1] : vector<32x1xf32> to vector<32xf32>
      %40 = vector.shape_cast %39 : vector<32xf32> to vector<1x32xf32>
      %cst_23 = arith.constant 0.00510204071 : f32
      %41 = vector.broadcast %cst_23 : f32 to vector<1x32xf32>
      %42 = arith.mulf %40, %41 : vector<1x32xf32>
      %c0_24 = arith.constant 0 : index
      %c0_25 = arith.constant 0 : index
      %43 = vector.load %arg11[%c0_24, %c0_25] : memref<8x1xf32, #tpu.memory_space<vmem>>, vector<8x1xf32>
      %cst_26 = arith.constant dense<0.000000e+00> : vector<8xf32>
      %44 = vector.multi_reduction <add>, %43, %cst_26 [1] : vector<8x1xf32> to vector<8xf32>
      %45 = vector.shape_cast %44 : vector<8xf32> to vector<1x8xf32>
      %cst_27 = arith.constant 0.00255102036 : f32
      %46 = vector.broadcast %cst_27 : f32 to vector<1x8xf32>
      %47 = arith.mulf %45, %46 : vector<1x8xf32>
      %c0_28 = arith.constant 0 : index
      %c0_29 = arith.constant 0 : index
      %48 = vector.load %arg4[%c0_28, %c0_29] : memref<32x16xf32, #tpu.memory_space<vmem>>, vector<32x16xf32>
      %cst_30 = arith.constant dense<0.000000e+00> : vector<1x16xf32>
      %49 = tpu.matmul %42, %48, %cst_30 {dimension_numbers = #tpu.dot_dimension_numbers<[1], [0], [0], [1], [0, 0, 1, 1], [], []>} : vector<1x32xf32>, vector<32x16xf32>, vector<1x16xf32> -> vector<1x16xf32>
      %c0_31 = arith.constant 0 : index
      %c0_32 = arith.constant 0 : index
      %50 = vector.load %arg5[%c0_31, %c0_32] : memref<1x16xf32, #tpu.memory_space<vmem>>, vector<1x16xf32>
      %51 = arith.addf %49, %50 : vector<1x16xf32>
      %c0_33 = arith.constant 0 : index
      %c0_34 = arith.constant 0 : index
      %52 = vector.load %arg6[%c0_33, %c0_34] : memref<16x128xf32, #tpu.memory_space<vmem>>, vector<16x128xf32>
      %cst_35 = arith.constant dense<0.000000e+00> : vector<1x128xf32>
      %53 = tpu.matmul %51, %52, %cst_35 {dimension_numbers = #tpu.dot_dimension_numbers<[1], [0], [0], [1], [0, 0, 1, 1], [], []>} : vector<1x16xf32>, vector<16x128xf32>, vector<1x128xf32> -> vector<1x128xf32>
      %c0_36 = arith.constant 0 : index
      %c0_37 = arith.constant 0 : index
      %54 = vector.load %arg7[%c0_36, %c0_37] : memref<8x128xf32, #tpu.memory_space<vmem>>, vector<8x128xf32>
      %cst_38 = arith.constant dense<0.000000e+00> : vector<1x128xf32>
      %55 = tpu.matmul %47, %54, %cst_38 {dimension_numbers = #tpu.dot_dimension_numbers<[1], [0], [0], [1], [0, 0, 1, 1], [], []>} : vector<1x8xf32>, vector<8x128xf32>, vector<1x128xf32> -> vector<1x128xf32>
      %56 = arith.addf %53, %55 : vector<1x128xf32>
      %c0_39 = arith.constant 0 : index
      %c0_40 = arith.constant 0 : index
      %57 = vector.load %arg8[%c0_39, %c0_40] : memref<1x128xf32, #tpu.memory_space<vmem>>, vector<1x128xf32>
      %58 = arith.addf %56, %57 : vector<1x128xf32>
      %c0_41 = arith.constant 0 : index
      %c0_42 = arith.constant 0 : index
      %c0_43 = arith.constant 0 : index
      %59 = vector.load %arg9[%c0_41, %c0_42, %c0_43] : memref<1x1x128xf32, #tpu.memory_space<vmem>>, vector<1x1x128xf32>
      %60 = vector.shape_cast %59 : vector<1x1x128xf32> to vector<1x128xf32>
      %61 = vector.shape_cast %58 : vector<1x128xf32> to vector<1x1x128xf32>
      tpu.vector_store %arg9[%c0_41, %c0_42, %c0_43], %61 {strides = array<i32>} : memref<1x1x128xf32, #tpu.memory_space<vmem>>, vector<1x1x128xf32>,
    } else {
    }
    return
  }
  func.func @transform_0(%arg0: i32, %arg1: i32) -> (i32, i32, i32) {
    %c0_i32 = arith.constant 0 : i32
    %c0_i32_0 = arith.constant 0 : i32
    return %arg0, %c0_i32, %arg1 : i32, i32, i32
  }
  func.func @transform_1(%arg0: i32, %arg1: i32) -> (i32, i32, i32) {
    %c0_i32 = arith.constant 0 : i32
    %c0_i32_0 = arith.constant 0 : i32
    return %arg0, %c0_i32, %arg1 : i32, i32, i32
  }
  func.func @transform_2(%arg0: i32, %arg1: i32) -> (i32, i32) {
    %c0_i32 = arith.constant 0 : i32
    %c0_i32_0 = arith.constant 0 : i32
    %c0_i32_1 = arith.constant 0 : i32
    return %c0_i32, %c0_i32_0 : i32, i32
  }
  func.func @transform_3(%arg0: i32, %arg1: i32) -> (i32, i32) {
    %c0_i32 = arith.constant 0 : i32
    %c0_i32_0 = arith.constant 0 : i32
    %c0_i32_1 = arith.constant 0 : i32
    return %c0_i32, %c0_i32_0 : i32, i32
  }
  func.func @transform_4(%arg0: i32, %arg1: i32) -> (i32, i32) {
    %c0_i32 = arith.constant 0 : i32
    %c0_i32_0 = arith.constant 0 : i32
    %c0_i32_1 = arith.constant 0 : i32
    return %c0_i32, %c0_i32_0 : i32, i32
  }
  func.func @transform_5(%arg0: i32, %arg1: i32) -> (i32, i32) {
    %c0_i32 = arith.constant 0 : i32
    %c0_i32_0 = arith.constant 0 : i32
    %c0_i32_1 = arith.constant 0 : i32
    return %c0_i32, %c0_i32_0 : i32, i32
  }
  func.func @transform_6(%arg0: i32, %arg1: i32) -> (i32, i32) {
    %c0_i32 = arith.constant 0 : i32
    %c0_i32_0 = arith.constant 0 : i32
    %c0_i32_1 = arith.constant 0 : i32
    return %c0_i32, %c0_i32_0 : i32, i32
  }
  func.func @transform_7(%arg0: i32, %arg1: i32) -> (i32, i32, i32) {
    %c0_i32 = arith.constant 0 : i32
    %c0_i32_0 = arith.constant 0 : i32
    %c0_i32_1 = arith.constant 0 : i32
    return %arg0, %c0_i32, %c0_i32_0 : i32, i32, i32
  }
}

</mosaic_0001>

<bundles_post_ra>
// kernel: basic_head_forward.1
= control target key start
LH: loop header
LB: loop body
LE: loop exit
PB: predicated region body
PF: predicated region fallthrough
CT: control target
= control target key end

     0   :  { %s1394_s0 = inlined_call_operand.vmem [shape: f32[2,32,196], index: 0, kind: input, shape index: {}]   ;;  %s1395_s1 = inlined_call_operand.vmem [shape: f32[2,8,392], index: 1, kind: input, shape index: {}]   ;;  %s1396_s2 = inlined_call_operand.vmem [shape: f32[32,16], index: 2, kind: input, shape index: {}]   ;;  %s1397_s3 = inlined_call_operand.vmem [shape: f32[1,16], index: 3, kind: input, shape index: {}]   ;;  %s1398_s4 = inlined_call_operand.vmem [shape: f32[16,128], index: 4, kind: input, shape index: {}]   ;;  %s1399_s5 = inlined_call_operand.vmem [shape: f32[8,128], index: 5, kind: input, shape index: {}]   ;;  %s1400_s6 = inlined_call_operand.vmem [shape: f32[1,128], index: 6, kind: input, shape index: {}]   ;;  %s1401_s7 = inlined_call_operand.hbm [shape: f32[2,1,128], index: 7, kind: output, shape index: {}]  }
   0x1   :  { %1407 = sst [smem:[#allocation13_spill]] %s1394_s0 }
   0x2   :  { %12 = vsyncpa [#allocation6], 0 }
   0x3   :  { %14 = vsyncpa [#allocation6 + $0x1], 0  ;;  %s1159_s24 = smov 0   ;;  %s1161_s25 = smov 0  }
   0x4   :  { %s1163_s26 = smov 0   ;;  %s1165_s27 = smov 0  }
   0x5   :  { %s1167_s28 = smov 0   ;;  %s1169_s29 = smov 0  }
   0x6   :  { %s1171_s30 = smov 0   ;;  %s1173_s8 = smov 0  }
   0x7   :  { %s1175_s9 = smov 0   ;;  %s1177_s10 = smov 0  }
   0x8 LB: > { %1408 = sst [smem:[#allocation8_spill]] %s1103_s8  ;;  %s843_s11 = sadd.s32 4294967295, %s1111_s10   ;;  %s1111_s10 = sphi %s1177_s10, %s20_s10   ;;  %s1107_s9 = sphi %s1175_s9, %s1423_s9   ;;  %s1103_s8 = sphi %s1173_s8, %s1422_s8   ;;  %s1099_s30 = sphi %s1171_s30, %s1421_s30   ;;  %s1095_s29 = sphi %s1169_s29, %s1420_s29   ;;  %s1091_s28 = sphi %s1167_s28, %s1428_s28   ;;  %s1087_s27 = sphi %s1165_s27, %s1427_s27   ;;  %s1083_s26 = sphi %s1163_s26, %s1426_s26   ;;  %s1079_s25 = sphi %s1161_s25, %s1425_s25   ;;  %s1075_s24 = sphi %s1159_s24, %s1424_s24  }
   0x9   : > { %1409 = sst [smem:[#allocation9_spill]] %s1107_s9  ;;  %s844_s12 = sadd.s32 4294967294, %s1111_s10  }
   0xa   : > { %s29_s13 = sadd.s32 1, %s1103_s8  ;;  %s32_s14 = sadd.s32 1, %s1107_s9 }
   0xb   : > { %p30_p0 = scmp.ge.s32.totalorder %s29_s13, 2  ;;  %s41_s15 = sadd.s32 1, %s1091_s28 }
   0xc   : > { %p48_p1 = scmp.ne.s32.totalorder %s1091_s28, %s1087_s27  ;;  %p49_p2 = scmp.eq.s32.totalorder %s1111_s10, 0 }
   0xd   : > { %s1430_s13 = smov (%p30_p0, %s29_s13), 0  ;;  %s1432_s14 = smov (!%p30_p0, %s32_s14), %s1107_s9 }
   0xe   : > { %1410 = sst [smem:[#allocation10_spill]] %s1430_s13  ;;  %s37_s16 = ssub.s32 %s1103_s8, %s1430_s13 }
   0xf   : > { %p1222_p3 = por %p49_p2, %p48_p1  ;;  %p34_p4 = scmp.ge.s32.totalorder %s1432_s14, 2 }
  0x10   : > { %s200_s18 = sadd.s32 1, %s1083_s26  ;;  %p210_p5 = scmp.ne.s32.totalorder %s1083_s26, %s1079_s25 }
  0x11   : > { %p211_p6 = scmp.eq.s32.totalorder %s843_s11, 3  ;;  %s1434_s14 = smov (%p34_p4, %s1432_s14), 0 }
  0x12   : > { %1412 = sst [smem:[#allocation11_spill]] %s1434_s14  ;;  %p216_p8 = scmp.ne.s32.totalorder %s1079_s25, %s1075_s24 }
  0x13   : > { %p1231_p7 = por %p211_p6, %p210_p5  ;;  %s36_s20 = ssub.s32 %s1107_s9, %s1434_s14 }
  0x14   : > { %p217_p9 = scmp.eq.s32.totalorder %s844_s12, 3  ;;  %s38_s21 = sor.u32 %s37_s16, %s36_s20 }
  0x15   : > { %p198_p10 = scmp.eq.s32.totalorder %s36_s20, 0  ;;  %p39_p11 = scmp.eq.s32.totalorder %s38_s21, 0 }
  0x16   : > { %p1239_p12 = por %p217_p9, %p216_p8  ;;  %p846_p13 = scmp.ge.s32.totalorder %s1111_s10, 4 }
  0x17   : > { %s1244_s23 = scalar_select %p198_p10, %s1083_s26, %s200_s18  }
  0x18   : > { %s1414_s22 = scalar_select %p1239_p12, 1, 0 }
  0x19   : > { %s1247_s11 = scalar_select %p39_p11, %s1091_s28, %s41_s15  }
  0x1a   : > { %1415 = sst [smem:[#allocation12_spill]] %s1414_s22  ;;  %248 = sbr.rel (%p846_p13) target bundleno = 45 (0x2d), region = 36 }
  0x21   : > { %251 = sbr.rel (!%p1222_p3) target bundleno = 45 (0x2d), region = 40  ;;  %s253_s12 = sand.u32 (%p1222_p3), 1, %s1091_s28  }
  0x22   : > { %s848_s16 = sshll.u32 (%p1222_p3), %s1107_s9, 3  ;;  %s847_s20 = sshll.u32 (%p1222_p3), %s253_s12, 5 }
  0x23   : > { %s257_s21 = sadd.s32 (%p1222_p3), %s1103_s8, %s848_s16  ;;  %s1416_s0 = sld [smem:[#allocation13_spill]] (%p1222_p3) }
  0x24   : > { %s849_s14 = sshll.u32 (%p1222_p3), %s257_s21, 3  ;;  %s255_s15 = scalar_lea.vmem (%p1222_p3), [#allocation4], %s847_s20 }
  0x29   : > { %s259_s18 = scalar_lea.vmem %s1416_s0, %s849_s14 }
  0x2a   : > { %v293_v0 = vld [vmem:[%s259_s18] sm:$0xff]  ;;  %v295_v1 = vld [vmem:[%s259_s18 + $0x10] sm:$0xff] }
  0x2b   : > { %v297_v2 = vld [vmem:[%s259_s18 + $0x20] sm:$0xff]  ;;  %294 = vst [vmem:[%s255_s15] sm:$0xff] %v293_v0  ;;  %296 = vst [vmem:[%s255_s15 + $0x8] sm:$0xff] %v295_v1  ;;  %v299_v3 = vld [vmem:[%s259_s18 + $0x30] sm:$0xff] }
  0x2c   : > { %298 = vst [vmem:[%s255_s15 + $0x10] sm:$0xff] %v297_v2  ;;  %300 = vst [vmem:[%s255_s15 + $0x18] sm:$0xff] %v299_v3 }
  0x2d PF: > { %p850_p0 = scmp.ge.s32.totalorder %s1111_s10, 1  ;;  %p318_p1 = scmp.lt.s32.totalorder %s1111_s10, 5 }
  0x2f   : > { %p319_p2 = pnand %p850_p0, %p318_p1 }
  0x30   : > { %s325_s13 = sand.u32 (!%p319_p2), 1, %s1087_s27   ;;  %s362_s14 = sand.u32 (!%p319_p2), 1, %s1079_s25  }
  0x31   : > { %322 = sbr.rel (%p319_p2) target bundleno = 818 (0x332), region = 82  ;;  %s851_s17 = sshll.u32 (!%p319_p2), %s325_s13, 5 }
  0x32   : > { %s852_s22 = sshll.u32 (!%p319_p2), %s1095_s29, 1  ;;  %p365_p3 = scmp.lt.s32.totalorder (!%p319_p2), %s1099_s30, 1 }
  0x33   : > { %p367_p4 = scmp.lt.s32.totalorder (!%p319_p2), %s852_s22, 3  ;;  %s327_s9 = scalar_lea.vmem (!%p319_p2), [#allocation4], %s851_s17 }
  0x34   : > { %s1270_s8 = scalar_lea.vmem (!%p319_p2), [#allocation5], %s362_s14  ;;  %p855_p5 = scmp.ne.s32.totalorder (!%p319_p2), %s1095_s29, 0 }
  0x38   : > { %s366_s12 = scalar_select %p365_p3, %s1099_s30, 1 }
  0x39   : > { %s1436_s22 = smov (!%p367_p4, %s852_s22), 3  ;;  %377 = sbr.rel (%p855_p5) target bundleno = 64 (0x40), region = 90 }
  0x3a   : > { %s853_s16 = sshll.u32 %s366_s12, 2  ;;  %vm378_vm0 = vcmask (!%p855_p5), 7168   ;;  %v1113_v4 = vmov (!%p855_p5), 0.0  }
  0x3b   : > { %s370_s20 = sadd.s32 %s853_s16, %s1436_s22  ;;  %379 = vst.msk [vmem:[#allocation2] sm:$0xff] (!%p855_p5), %vm378_vm0, %v1113_v4  ;;  %380 = vst.msk [vmem:[#allocation2 + $0x8] sm:$0xff] (!%p855_p5), %vm378_vm0, %v1113_v4 }
  0x3c   : > { %s854_s21 = sshll.u32 %s370_s20, 3  ;;  %381 = vst.msk [vmem:[#allocation2 + $0x10] sm:$0xff] (!%p855_p5), %vm378_vm0, %v1113_v4  ;;  %382 = vst.msk [vmem:[#allocation2 + $0x18] sm:$0xff] (!%p855_p5), %vm378_vm0, %v1113_v4 }
  0x3d   : > { %s372_s0 = scalar_lea.vmem %s1395_s1, %s854_s21  ;;  %383 = vst.msk [vmem:[#allocation3] sm:$0xff] (!%p855_p5), %vm378_vm0, %v1113_v4 }
  0x40 PF: > { %v388_v5 = vlaneseq  ;;  %s856_s27 = sshll.u32 %s1095_s29, 7  ;;  %s857_s13 = sshll.u32 %s1095_s29, 8  ;;  %v384_v7 = vld [vmem:[%s327_s9] sm:$0xff]  ;;  %v386_v9 = vld [vmem:[%s327_s9 + $0x10] sm:$0xff]  ;;  %v385_v12 = vld [vmem:[%s327_s9 + $0x8] sm:$0xff]  ;;  %vm416_vm4 = vcmask 7168  }
  0x41   : > { %s391_s17 = scvt.s32.f32 %s856_s27  ;;  %s425_s22 = scvt.s32.f32 %s857_s13  ;;  %v387_v14 = vld [vmem:[%s327_s9 + $0x18] sm:$0xff]  ;;  %v422_v16 = vld [vmem:[%s372_s0 + $0x8] sm:$0xff] }
  0x42   : > { %v1276_v6 = vand.u32 127, %v388_v5  ;;  %v421_v15 = vld [vmem:[%s372_s0] sm:$0xff]  ;;  %v401_v32 = vld [vmem:[#allocation2 + $0x8] sm:$0xff]  ;;  %p858_p6 = scmp.ne.s32.totalorder %s1095_s29, 1 }
  0x43   : > { %s392_s12 = ssub.f32 196.0, %s391_s17  ;;  %v400_v26 = vld [vmem:[#allocation2] sm:$0xff]  ;;  %v402_v27 = vld [vmem:[#allocation2 + $0x10] sm:$0xff]  ;;  %v403_v33 = vld [vmem:[#allocation2 + $0x18] sm:$0xff]  ;;  %v1114_v44 = vmov (!%p858_p6), 0   ;;  %v1115_v53 = vmov (!%p858_p6), 0.0|0.0  }
  0x44   : > { %v393_v8 = vcvt.s32.f32 %v1276_v6  ;;  %v423_v10 = vadd.s32 128, %v1276_v6  ;;  %s426_s16 = ssub.f32 392.0, %s425_s22  ;;  %v433_v38 = vld [vmem:[#allocation3] sm:$0xff]  ;;  %1000 = vset.pattern.permute.xlu1 (!%p858_p6), %v1114_v44  ;;  %999 = vset.pattern.permute.xlu0 (!%p858_p6), %v1114_v44  ;;  %v459_v51 = vld [vmem:[%s1396_s2 + $0x8] sm:$0xff] (!%p858_p6)  ;;  %v460_v55 = vld [vmem:[%s1396_s2 + $0x10] sm:$0xff] (!%p858_p6)  ;;  %vm1116_vm5 = vmmov (!%p858_p6), 0  }
  0x45   : > { %v394_v11 = vstv %s392_s12  ;;  %v458_v48 = vld [vmem:[%s1396_s2] sm:$0xff] (!%p858_p6)  ;;  %898 = vmatprep.subr.bf16.mxu0 (!%p858_p6), %v1115_v53  ;;  %v461_v56 = vld [vmem:[%s1396_s2 + $0x18] sm:$0xff] (!%p858_p6)  ;;  %v1117_v59 = vmov (!%p858_p6), 0.0   ;;  %v480_v61 = vshrl.u32 (!%p858_p6), %v388_v5, 7  ;;  %v483_v62 = vadd.s32 (!%p858_p6), 4294967288, %v1276_v6  ;;  %v578_v13 = vld [vmem:[%s1398_s4 + $0x8] sm:$0xff] (!%p858_p6) }
  0x46   : > { %vm1280_vm1 = vcmp.lt.f32.partialorder %v393_v8, %v394_v11  ;;  %v427_v17 = vcvt.s32.f32 %v423_v10  ;;  %v428_v18 = vstv %s426_s16  ;;  %v899_v54 = vpack.c.bf16 (!%p858_p6), %v459_v51, %v458_v48  ;;  %883 = vmatprep.mubr.msk.f32.mxu0 (!%p858_p6), %vm1116_vm5, %v1117_v59  ;;  %v579_v60 = vld [vmem:[%s1399_s5] sm:$0xff] (!%p858_p6)  ;;  %886 = vmatprep.subr.mxu1 (!%p858_p6), %v1117_v59 }
  0x47   : > { %v396_v19 = vsel %vm1280_vm1, %v384_v7, 0.0  ;;  %v398_v20 = vsel %vm1280_vm1, %v386_v9, 0.0  ;;  %vm429_vm2 = vcmp.lt.f32.partialorder %v393_v8, %v428_v18  ;;  %v397_v21 = vsel %vm1280_vm1, %v385_v12, 0.0  ;;  %888 = vmatprep.mubr.msk.f32.mxu1 (!%p858_p6), %vm1116_vm5, %v1117_v59  ;;  %887 = vmatpush3.msra.mxu1 (!%p858_p6), %v579_v60  ;;  %v577_v5 = vld [vmem:[%s1398_s4] sm:$0xff] (!%p858_p6) }
  0x48   : > { %404 = vadd.xlane.f32.xlu0 %v396_v19  ;;  %408 = vadd.xlane.f32.xlu1 %v398_v20  ;;  %vm430_vm3 = vcmp.lt.f32.partialorder %v427_v17, %v428_v18  ;;  %v399_v22 = vsel %vm1280_vm1, %v387_v14, 0.0  ;;  %v431_v23 = vsel %vm429_vm2, %v421_v15, 0.0  ;;  %v902_v58 = vpack.c.bf16 (!%p858_p6), %v461_v56, %v460_v55 }
  0x49   : > { %v432_v24 = vsel %vm430_vm3, %v422_v16, 0.0  ;;  %900 = vmatpush3.bf16.msra.mxu0 (!%p858_p6), %v899_v54  ;;  %904 = vmatprep.subr.bf16.mxu1 (!%p858_p6), %v1115_v53  ;;  %v490_v63 = vadd.s32 (!%p858_p6), 4294967280, %v1276_v6  ;;  %v497_v0 = vadd.s32 (!%p858_p6), 4294967272, %v1276_v6  ;;  %v481_v3 = vsub.s32 (!%p858_p6), %v1276_v6, %v480_v61 }
  0x4a   : > { %v434_v25 = vadd.f32 %v432_v24, %v431_v23  ;;  %901 = vmatprep.subr.bf16.mxu0 (!%p858_p6), %v1115_v53  ;;  %v486_v4 = vsub.s32 (!%p858_p6), %v483_v62, %v480_v61  ;;  %vm488_vm6 = vcmask (!%p858_p6), 130112   ;;  %vm495_vm7 = vcmask (!%p858_p6), 195712  }
  0x4b   : > { %v493_v7 = vsub.s32 (!%p858_p6), %v490_v63, %v480_v61  ;;  %v500_v8 = vsub.s32 (!%p858_p6), %v497_v0, %v480_v61  ;;  %vm502_vm8 = vcmask (!%p858_p6), 261312   ;;  %vm504_vm9 = vcmask (!%p858_p6), 261120  }
  0x4c   : > { %406 = vadd.xlane.f32.xlu0 %v397_v21  ;;  %410 = vadd.xlane.f32.xlu1 %v399_v22  ;;  %vm588_vm10 = vcmask (!%p858_p6), 64512   ;;  %v905_v18 = vpack.c.bf16 (!%p858_p6), %v578_v13, %v577_v5  ;;  %v462_v21 = vld [vmem:[%s1397_s3] sm:$0x1] (!%p858_p6)  ;;  %vm661_vm11 = vcmask (!%p858_p6), 130048  }
  0x4d   : > { %903 = vmatpush3.bf16.msra.mxu0 (!%p858_p6), %v902_v58 }
  0x50   : > { %435 = vadd.xlane.f32.xlu0 %v434_v25 }
  0xd5   : > { %v405_v28 = vpop.xlane.xlu0 %404  ;;  %v409_v29 = vpop.xlane.xlu1 %408 }
  0xd6   : > { %v412_v30 = vadd.f32 %v405_v28, %v400_v26  ;;  %v414_v31 = vadd.f32 %v409_v29, %v402_v27  ;;  %v735_v28 = vld [vmem:[%s1400_s6] sm:$0x1] (!%p858_p6) }
  0xd8   : > { %417 = vst.msk [vmem:[#allocation2] sm:$0xff] %vm416_vm4, %v412_v30  ;;  %419 = vst.msk [vmem:[#allocation2 + $0x10] sm:$0xff] %vm416_vm4, %v414_v31 }
  0xd9   : > { %v407_v34 = vpop.xlane.xlu0 %406  ;;  %v411_v35 = vpop.xlane.xlu1 %410 }
  0xda   : > { %v413_v36 = vadd.f32 %v407_v34, %v401_v32  ;;  %v415_v37 = vadd.f32 %v411_v35, %v403_v33  ;;  %442 = sbr.rel (%p858_p6) target bundleno = 794 (0x31a), region = 94 }
  0xdc   : > { %418 = vst.msk [vmem:[#allocation2 + $0x8] sm:$0xff] %vm416_vm4, %v413_v36  ;;  %420 = vst.msk [vmem:[#allocation2 + $0x18] sm:$0xff] %vm416_vm4, %v415_v37 }
  0xdd   : > { %v436_v39 = vpop.xlane.xlu0 %435 }
  0xde   : > { %v437_v40 = vadd.f32 %v436_v39, %v433_v38 }
  0xdf   : > { %v445_v41 = vld [vmem:[#allocation2 + $0x10] sm:$0xff] (!%p858_p6)  ;;  %v443_v42 = vld [vmem:[#allocation2] sm:$0xff] (!%p858_p6) }
  0xe0   : > { %438 = vst.msk [vmem:[#allocation3] sm:$0xff] %vm416_vm4, %v437_v40  ;;  %v453_v45 = vmul.f32 (!%p858_p6), 0.0051020407, %v445_v41  ;;  %v451_v46 = vmul.f32 (!%p858_p6), 0.0051020407, %v443_v42 }
  0xe2   : > { %474 = vperm.xlu1 %1000, %v453_v45   ;;  %468 = vperm.xlu0 %999, %v451_v46  }
  0xe3   : > { %v446_v43 = vld [vmem:[#allocation2 + $0x18] sm:$0xff]  ;;  %v444_v47 = vld [vmem:[#allocation2 + $0x8] sm:$0xff] }
  0xe4   : > { %v454_v49 = vmul.f32 0.0051020407, %v446_v43  ;;  %v452_v50 = vmul.f32 0.0051020407, %v444_v47 }
  0xe6   : > { %477 = vperm.xlu1 %1000, %v454_v49   ;;  %471 = vperm.xlu0 %999, %v452_v50  }
  0xe7   : > { %v455_v52 = vld [vmem:[#allocation3] sm:$0xff] }
  0xe8   : > { %v457_v57 = vmul.f32 0.0025510204, %v455_v52 }
  0xea   : > { %582 = vperm.xlu0 %999, %v457_v57  }
 0x161   : > { %v475_v1 = vpop.permute.xlu1 %474  ;;  %v469_v2 = vpop.permute.xlu0 %468 }
 0x162   : > { %v482_v11 = vrot.slane %v469_v2, %v481_v3  ;;  %v494_v14 = vrot.slane %v475_v1, %v493_v7 }
 0x165   : > { %v478_v9 = vpop.permute.xlu1 %477  ;;  %v472_v10 = vpop.permute.xlu0 %471 }
 0x166   : > { %v487_v12 = vrot.slane %v472_v10, %v486_v4  ;;  %v501_v6 = vrot.slane %v478_v9, %v500_v8 }
 0x168   : > { %v489_v15 = vsel %vm488_vm6, %v487_v12, %v482_v11 }
 0x169   : > { %v583_v16 = vpop.permute.xlu0 %582  ;;  %v496_v17 = vsel %vm495_vm7, %v494_v14, %v489_v15 }
 0x16a   : > { %v587_v19 = vrot.slane %v583_v16, %v481_v3  ;;  %v503_v20 = vsel %vm502_vm8, %v501_v6, %v496_v17 }
 0x16b   : > { %884 = vmatmul.mubr.msk.f32.vlgmr.msra.gmra.mrb[0].mxu0 %vm504_vm9, %v503_v20 }
 0x16c   : > { %889 = vmatmul.mubr.msk.f32.vlgmr.msra.gmra.mrb[0].mxu1 %vm588_vm10, %v587_v19 }
 0x16d   : > { %906 = vmatpush3.bf16.msra.mxu1 %v905_v18  ;;  %895 = vmatprep.mubr.msk.f32.mxu1 %vm1116_vm5, %v1117_v59 }
 0x23e   : > { %v573_v22 = vpop.f32.mrb[0].mxu0 }
 0x23f   : > { %v574_v23 = vadd.f32 %v573_v22, %v462_v21  ;;  %v885_v24 = vpop.f32.mrb[1].mxu0  ;;  %v657_v25 = vpop.f32.mrb[0].mxu1 }
 0x240   : > { %v890_v26 = vpop.f32.mrb[1].mxu1 }
 0x241   : > { %896 = vmatmul.mubr.msk.f32.vlgmr.msra.gmra.mrb[2].mxu1 %vm661_vm11, %v574_v23 }
 0x314   : > { %v731_v27 = vpop.f32.mrb[2].mxu1 }
 0x315   : > { %v732_v29 = vadd.f32 %v731_v27, %v657_v25  ;;  %v897_v30 = vpop.f32.mrb[3].mxu1 }
 0x317   : > { %v736_v31 = vadd.f32 %v735_v28, %v732_v29 }
 0x319   : > { %737 = vst [vmem:[%s1270_s8] sm:$0x1] %v736_v31 }
 0x31a PF: > { %s862_s18 = sshll.u32 %s1099_s30, 4  ;;  %s751_s17 = sshll.u32 %s1270_s8, 4  ;;  %s752_s17 = int_to_ptr.vmem [resolvable:$true] %s751_s17 }
 0x31b   : > { %s1338_s13 = scalar_lea.hbm %s1401_s7, %s862_s18  ;;  %s739_s22 = scalar_lea.sflag [#allocation6], %s362_s14 }
 0x31c   : > { %s1001_s12 = scalar_lea.vmem %s752_s17, 16  ;;  %s1118_s16 = smov [#allocation5]  }
 0x31d   : > { %p1002_p8 = scmp.ne.s32.totalorder %s752_s17, %s1001_s12  ;;  %s1005_s0 = sshll.u32 %s1118_s16, 4  ;;  %s1006_s0 = int_to_ptr.vmem [resolvable:$false] %s1005_s0 }
 0x31e   : > { %s1007_s9 = scalar_lea.vmem %s1006_s0, 32  ;;  %p1008_p11 = scmp.lt.s32.totalorder %s752_s17, %s1006_s0 }
 0x31f   : > { %p1003_p9 = pnand %p1002_p8, %p1231_p7  ;;  %p1009_p13 = scmp.lt.s32.totalorder %s1007_s9, %s1001_s12 }
 0x321   : > { %p1004_p10 = pneg %p1003_p9  ;;  %p1010_p0 = por %p1009_p13, %p1008_p11 }
 0x323   : > { %p1011_p1 = pnand %p1010_p0, %p1004_p10 }
 0x325   : > { %1014 = shalt.err (!%p1011_p1)
}
 0x326   : > { %s1015_s30 = scalar_lea.hbm %s1338_s13, 16  ;;  %s1019_s20 = scalar_lea.hbm %s1401_s7, 32 }
 0x327   : > { %p1016_p2 = scmp.ne.s32.totalorder %s1338_s13, %s1015_s30  ;;  %p1020_p5 = scmp.lt.u32.totalorder %s1338_s13, %s1401_s7 }
 0x328   : > { %p1021_p6 = scmp.lt.u32.totalorder %s1019_s20, %s1015_s30  ;;  %p1023_p9 = scmp.lt.u32.totalorder %s1015_s30, %s1338_s13 }
 0x329   : > { %p1017_p3 = pnand %p1016_p2, %p1231_p7 }
 0x32a   : > { %p1022_p8 = por %p1021_p6, %p1020_p5 }
 0x32b   : > { %p1018_p4 = pneg %p1017_p3 }
 0x32c   : > { %p1024_p10 = por %p1023_p9, %p1022_p8 }
 0x32e   : > { %p1025_p11 = pnand %p1024_p10, %p1018_p4 }
 0x330   : > { %1028 = shalt.err (!%p1025_p11)
}
 0x331   : > { %907 = dma.vmem_to_hbm [thread:$0]  (%p1231_p7), %s752_s17, 16, %s1338_s13, %s739_s22  }
 0x332 PF: > { %p913_p13 = scmp.ge.s32.totalorder %s1111_s10, 2  ;;  %s763_s15 = sand.u32 1, %s1075_s24  }
 0x333   : > { %s764_s27 = scalar_lea.sflag [#allocation6], %s763_s15 }
 0x334   : > { %p910_p0 = pnand %p913_p13, %p1239_p12 }
 0x336   : > { %1070 = dma.done.wait (!%p910_p0), %s764_s27, 16  }
 0x337   : > { %1072 = vsyncadd (!%p910_p0), %s764_s27, 4294967280  ;;  %s20_s10 = sadd.s32 1, %s1111_s10   ;;  %s1420_s29 = sld [smem:[#allocation8_spill]] }
 0x338   : > { %p17_p1 = scmp.ge.s32.totalorder %s20_s10, 6   ;;  %s1421_s30 = sld [smem:[#allocation9_spill]] }
 0x339   : > { %s1422_s8 = sld [smem:[#allocation10_spill]]  ;;  %s1423_s9 = sld [smem:[#allocation11_spill]] }
 0x33a   : > { %s1424_s24 = smov %s1079_s25  ;;  %s1425_s25 = smov %s1083_s26 }
 0x33b   : > { %s1426_s26 = smov %s1244_s23  ;;  %s1427_s27 = smov %s1091_s28 }
 0x33c   : > { %s1428_s28 = smov %s1247_s11  ;;  %19 = sbr.rel (!%p17_p1) target bundleno = 8 (0x8), region = 137 }
 0x343   :  { %768 = vsyncpa [#allocation6], 1 }
 0x344   :  { %770 = vsyncpa [#allocation6 + $0x1], 1 }

</bundles_post_ra>
